<compile_context>
chip_gen: v6e
topology: v6e:2x2x1
jax: 0.10.0
libtpu: 0.0.40
codegen_flags: <defaults>
</compile_context>

<pallas_src>
import functools
import math

import jax
import jax.numpy as jnp
from jax.experimental import pallas as pl
from jax.experimental.pallas import tpu as pltpu

# Per-grid-step block budget for the x / out tile.  ~2 MiB sits at ~85% of the
# measured HBM add roofline and keeps double-buffered in+out (+ tiny pe) under
# ~9 MiB of VMEM -> safe under the v5e 16 MiB scoped default and v7x's 64 MiB
# physical VMEM without touching vmem_limit_bytes.
_MAX_BLOCK_BYTES = 2 * 1024 * 1024


def _pe_add_kernel(x_ref, pe_ref, o_ref):
    # x_ref : (TB, TS, TL) activation tile
    # pe_ref: (TB, TS, 1) or (TB, 1, TL) float32 per-sample PE (broadcasts)
    # o_ref : (TB, TS, TL)
    o_ref[...] = (x_ref[...].astype(jnp.float32) + pe_ref[...]).astype(o_ref.dtype)


def _largest_aligned_tile(extent: int, max_tile: int, align: int) -> int:
    """Largest tile <= min(extent, max_tile), multiple of `align`, preferring
    tiles that divide `extent` (no remainder block)."""
    if extent <= max_tile:
        return extent
    cap = max(align, (max_tile // align) * align)
    cap = min(cap, extent)
    for cand in range(cap, align - 1, -align):
        if extent % cand == 0:
            return cand
    return cap  # accept a remainder tile if no divisor works


def _pick_tiles(B, S, L, itemsize, max_block_bytes=_MAX_BLOCK_BYTES):
    """Pick (TB, TS, TL) for a (B, S, L) array with L on lanes, S on sublanes."""
    s_align = 8 if itemsize >= 4 else (16 if itemsize == 2 else 32)
    # Lane tile: keep it >= 128 (lane-dense stores) unless L itself is smaller.
    if S * L * itemsize <= max_block_bytes:
        tl = L
    else:
        tl = _largest_aligned_tile(L, max(128, max_block_bytes // (S * itemsize)), 128)
    # Sublane tile: only split S when a single (S, tl) slab still overflows the
    # budget (very large channel counts).
    if S * tl * itemsize <= max_block_bytes:
        ts = S
    else:
        ts = _largest_aligned_tile(S, max(s_align, max_block_bytes // (tl * itemsize)), s_align)
    # Batch tile: fold samples so each grid step moves ~max_block_bytes.
    per_b = ts * tl * itemsize
    tb = max(1, min(B, max_block_bytes // max(per_b, 1)))
    while B % tb != 0:  # keep the batch axis remainder-free
        tb -= 1
    return tb, ts, tl


@functools.partial(jax.jit, donate_argnums=(0,))
def positional_encoding_forward(x_nchw, indices, pe):
    """x_nchw: (B, C, H, W); indices: (B,) int; pe: (max_len, 1, C) float32."""
    B, C, H, W = x_nchw.shape
    HW = H * W
    itemsize = jnp.dtype(x_nchw.dtype).itemsize

    # One-shot gather of the per-sample PE rows, kept in f32: (B, 1, C).
    pe_rows = pe[indices].astype(jnp.float32)

    # Layout choice:
    #   * HW >= 128 (typical pose-decoder feature maps): native NCHW viewed as
    #     (B, C, H*W) -- free reshape, H*W lane-dense, pe is a (.., C, 1)
    #     column broadcast along lanes.
    #   * HW < 128 and C more lane-friendly: channels-last (B, HW, C) so the
    #     output lane width is C (no masked partial stores); pe is the
    #     (.., 1, C) row broadcast along sublanes.
    channels_last = HW < 128 and C > HW

    if channels_last:
        x3 = jnp.transpose(x_nchw, (0, 2, 3, 1)).reshape(B, HW, C)
        pe_b = pe_rows                                 # (B, 1, C)
        S, L = HW, C
    else:
        x3 = x_nchw.reshape(B, C, HW)
        pe_b = jnp.transpose(pe_rows, (0, 2, 1))       # (B, C, 1)
        S, L = C, HW

    tb, ts, tl = _pick_tiles(B, S, L, itemsize)
    grid = (B // tb, pl.cdiv(S, ts), pl.cdiv(L, tl))   # lane axis innermost:
                                                       # pe block stays resident
    x_spec = pl.BlockSpec((tb, ts, tl), lambda b, s, l: (b, s, l))
    out_spec = pl.BlockSpec((tb, ts, tl), lambda b, s, l: (b, s, l))
    if channels_last:
        pe_spec = pl.BlockSpec((tb, 1, tl), lambda b, s, l: (b, 0, l))
    else:
        pe_spec = pl.BlockSpec((tb, ts, 1), lambda b, s, l: (b, s, 0))

    out3 = pl.pallas_call(
        _pe_add_kernel,
        out_shape=jax.ShapeDtypeStruct((B, S, L), x_nchw.dtype),
        grid_spec=pl.GridSpec(
            grid=grid,
            in_specs=[x_spec, pe_spec],
            out_specs=out_spec,
        ),
        input_output_aliases={0: 0},                   # write result into x's buffer
        cost_estimate=pl.CostEstimate(
            flops=B * C * HW,
            transcendentals=0,
            bytes_accessed=2 * B * C * HW * itemsize + B * C * 4,
        ),
        compiler_params=pltpu.CompilerParams(
            dimension_semantics=("parallel", "parallel", "parallel")),
    )(x3, pe_b)

    if channels_last:
        return jnp.transpose(out3.reshape(B, H, W, C), (0, 3, 1, 2))
    return out3.reshape(B, C, H, W)


def build_pe(d_model: int, max_len: int) -> jnp.ndarray:
    """Deterministic sin/cos PE buffer, shape (max_len, 1, d_model), float32."""
    position = jnp.arange(max_len, dtype=jnp.float32)[:, None]            # (max_len, 1)
    div_term = jnp.exp(
        jnp.arange(0, d_model, 2, dtype=jnp.float32) * (-math.log(10000.0) / d_model)
    )                                                                     # (ceil(d/2),)
    pe = jnp.zeros((max_len, d_model), dtype=jnp.float32)
    pe = pe.at[:, 0::2].set(jnp.sin(position * div_term))
    pe = pe.at[:, 1::2].set(jnp.cos(position * div_term)[:, : d_model // 2])
    return pe.reshape(max_len, 1, d_model)


if __name__ == "__main__":
    d_model = 32
    max_len = 64
    B, H, W = 2, 16, 16   # HW = 256 -> lane-dense channel-first path

    key = jax.random.PRNGKey(0)
    x = jax.random.normal(key, (B, d_model, H, W), dtype=jnp.float32)   # NCHW
    indices = jnp.array([3, 17], dtype=jnp.int32)                        # len == B
    pe = build_pe(d_model, max_len)

    # Pure-JAX reference of the PyTorch forward (computed BEFORE the kernel
    # call because x is donated to the in-place kernel).
    ref = x + pe[indices].reshape(B, d_model, 1, 1).astype(x.dtype)

    out = positional_encoding_forward(x, indices, pe)
    out = jax.block_until_ready(out)

    assert out.shape == ref.shape and out.dtype == ref.dtype
    assert jnp.allclose(out, ref, atol=1e-6, rtol=1e-6)

    print("KERNEL_OK")
</pallas_src>

<mosaic_0001>
module attributes {stable_mosaic.version = 11 : i64} {
  func.func @_pe_add_kernel(%arg0: i32, %arg1: i32, %arg2: i32, %arg3: memref<2x32x256xf32, #tpu.memory_space<vmem>>, %arg4: memref<2x32x1xf32, #tpu.memory_space<vmem>>, %arg5: memref<2x32x256xf32, #tpu.memory_space<vmem>>) attributes {dimension_semantics = [#tpu.dimension_semantics<parallel>, #tpu.dimension_semantics<parallel>, #tpu.dimension_semantics<parallel>], iteration_bounds = array<i64: 1, 1, 1>, scalar_prefetch = 0 : i64, scratch_operands = 0 : i64, tpu.core_type = #tpu.core_type<tc>, window_params = [{transform_indices = @transform_0, window_bounds = array<i64: 2, 32, 256>}, {transform_indices = @transform_1, window_bounds = array<i64: 2, 32, 1>}, {transform_indices = @transform_2, window_bounds = array<i64: 2, 32, 256>}]} {
    %c0 = arith.constant 0 : index
    %c0_0 = arith.constant 0 : index
    %c0_1 = arith.constant 0 : index
    %0 = vector.load %arg3[%c0, %c0_0, %c0_1] : memref<2x32x256xf32, #tpu.memory_space<vmem>>, vector<2x32x256xf32>
    %c0_2 = arith.constant 0 : index
    %c0_3 = arith.constant 0 : index
    %c0_4 = arith.constant 0 : index
    %1 = vector.load %arg4[%c0_2, %c0_3, %c0_4] : memref<2x32x1xf32, #tpu.memory_space<vmem>>, vector<2x32x1xf32>
    %2 = vector.broadcast %1 : vector<2x32x1xf32> to vector<2x32x256xf32>
    %3 = arith.addf %0, %2 : vector<2x32x256xf32>
    %c0_5 = arith.constant 0 : index
    %c0_6 = arith.constant 0 : index
    %c0_7 = arith.constant 0 : index
    %4 = vector.load %arg5[%c0_5, %c0_6, %c0_7] : memref<2x32x256xf32, #tpu.memory_space<vmem>>, vector<2x32x256xf32>
    tpu.vector_store %arg5[%c0_5, %c0_6, %c0_7], %3 {strides = array<i32>} : memref<2x32x256xf32, #tpu.memory_space<vmem>>, vector<2x32x256xf32>,
    return
  }
  func.func @transform_0(%arg0: i32, %arg1: i32, %arg2: i32) -> (i32, i32, i32) {
    %c0_i32 = arith.constant 0 : i32
    return %arg0, %arg1, %arg2 : i32, i32, i32
  }
  func.func @transform_1(%arg0: i32, %arg1: i32, %arg2: i32) -> (i32, i32, i32) {
    %c0_i32 = arith.constant 0 : i32
    %c0_i32_0 = arith.constant 0 : i32
    return %arg0, %arg1, %c0_i32 : i32, i32, i32
  }
  func.func @transform_2(%arg0: i32, %arg1: i32, %arg2: i32) -> (i32, i32, i32) {
    %c0_i32 = arith.constant 0 : i32
    return %arg0, %arg1, %arg2 : i32, i32, i32
  }
}

</mosaic_0001>

<bundles_post_ra>
// kernel: positional_encoding_forward.1
= control target key start
LH: loop header
LB: loop body
LE: loop exit
PB: predicated region body
PF: predicated region fallthrough
CT: control target
= control target key end

     0   :  { %v114_v0 = vmov 0   ;;  %s250_s1 = inlined_call_operand.vmem [shape: f32[2,32,1], index: 1, kind: input, shape index: {}]   ;;  %s251_s0 = inlined_call_operand.vmem [shape: f32[2,32,256], index: 0, kind: input, shape index: {}, may-alias: {0,2}]   ;;  %s252_s2 = inlined_call_operand.vmem [shape: f32[2,32,256], index: 2, kind: output, shape index: {}, may-alias: {0,2}]  }
   0x1   :  { %113 = vset.pattern.permute.xlu1 %v114_v0  ;;  %112 = vset.pattern.permute.xlu0 %v114_v0  ;;  %v29_v1 = vld [vmem:[%s250_s1 + $0x10] sm:$0xff]  ;;  %v27_v2 = vld [vmem:[%s250_s1] sm:$0xff]  ;;  %v30_v3 = vld [vmem:[%s250_s1 + $0x18] sm:$0xff] }
   0x2   :  { %47 = vperm.xlu1 %113, %v29_v1   ;;  %37 = vperm.xlu0 %112, %v27_v2   ;;  %v28_v4 = vld [vmem:[%s250_s1 + $0x8] sm:$0xff]  ;;  %v31_v6 = vld [vmem:[%s250_s1 + $0x20] sm:$0xff]  ;;  %v34_v7 = vld [vmem:[%s250_s1 + $0x38] sm:$0xff] }
   0x3   :  { %v32_v5 = vld [vmem:[%s250_s1 + $0x28] sm:$0xff]  ;;  %v33_v8 = vld [vmem:[%s250_s1 + $0x30] sm:$0xff]  ;;  %v15_v9 = vld [vmem:[%s251_s0 + $0x20] sm:$0xff] }
   0x4   :  { %v16_v10 = vld [vmem:[%s251_s0 + $0x28] sm:$0xff]  ;;  %v11_v11 = vld [vmem:[%s251_s0] sm:$0xff]  ;;  %v17_v19 = vld [vmem:[%s251_s0 + $0x30] sm:$0xff] }
   0x5   :  { %v12_v12 = vld [vmem:[%s251_s0 + $0x8] sm:$0xff]  ;;  %v18_v20 = vld [vmem:[%s251_s0 + $0x38] sm:$0xff]  ;;  %v13_v21 = vld [vmem:[%s251_s0 + $0x10] sm:$0xff] }
   0x6   :  { %52 = vperm.xlu1 %113, %v30_v3   ;;  %42 = vperm.xlu0 %112, %v28_v4   ;;  %v14_v22 = vld [vmem:[%s251_s0 + $0x18] sm:$0xff] }
   0xa   :  { %62 = vperm.xlu1 %113, %v32_v5   ;;  %57 = vperm.xlu0 %112, %v31_v6  }
   0xe   :  { %72 = vperm.xlu1 %113, %v34_v7   ;;  %67 = vperm.xlu0 %112, %v33_v8  }
  0x7d   :  { %v48_v13 = vpop.permute.xlu1 %47  ;;  %v38_v14 = vpop.permute.xlu0 %37 }
  0x7e   :  { %v79_v15 = vadd.f32 %v48_v13, %v15_v9  ;;  %v80_v16 = vadd.f32 %v48_v13, %v16_v10  ;;  %v75_v17 = vadd.f32 %v38_v14, %v11_v11  ;;  %v76_v18 = vadd.f32 %v38_v14, %v12_v12 }
  0x80   :  { %95 = vst [vmem:[%s252_s2 + $0x20] sm:$0xff] %v79_v15  ;;  %96 = vst [vmem:[%s252_s2 + $0x28] sm:$0xff] %v80_v16 }
  0x81   :  { %91 = vst [vmem:[%s252_s2] sm:$0xff] %v75_v17  ;;  %92 = vst [vmem:[%s252_s2 + $0x8] sm:$0xff] %v76_v18  ;;  %v53_v23 = vpop.permute.xlu1 %52  ;;  %v43_v24 = vpop.permute.xlu0 %42 }
  0x82   :  { %v81_v25 = vadd.f32 %v53_v23, %v17_v19  ;;  %v82_v26 = vadd.f32 %v53_v23, %v18_v20  ;;  %v77_v27 = vadd.f32 %v43_v24, %v13_v21  ;;  %v78_v28 = vadd.f32 %v43_v24, %v14_v22 }
  0x85   :  { %v63_v33 = vpop.permute.xlu1 %62  ;;  %v58_v34 = vpop.permute.xlu0 %57 }
  0x88   :  { %v21_v29 = vld [vmem:[%s251_s0 + $0x50] sm:$0xff]  ;;  %v22_v30 = vld [vmem:[%s251_s0 + $0x58] sm:$0xff]  ;;  %v19_v31 = vld [vmem:[%s251_s0 + $0x40] sm:$0xff] }
  0x89   :  { %v20_v32 = vld [vmem:[%s251_s0 + $0x48] sm:$0xff]  ;;  %v85_v35 = vadd.f32 %v63_v33, %v21_v29  ;;  %v86_v36 = vadd.f32 %v63_v33, %v22_v30  ;;  %v83_v37 = vadd.f32 %v58_v34, %v19_v31  ;;  %v73_v43 = vpop.permute.xlu1 %72  ;;  %v68_v44 = vpop.permute.xlu0 %67 }
  0x8a   :  { %97 = vst [vmem:[%s252_s2 + $0x30] sm:$0xff] %v81_v25  ;;  %98 = vst [vmem:[%s252_s2 + $0x38] sm:$0xff] %v82_v26  ;;  %v84_v38 = vadd.f32 %v58_v34, %v20_v32 }
  0x8b   :  { %93 = vst [vmem:[%s252_s2 + $0x10] sm:$0xff] %v77_v27  ;;  %94 = vst [vmem:[%s252_s2 + $0x18] sm:$0xff] %v78_v28 }
  0x92   :  { %v25_v39 = vld [vmem:[%s251_s0 + $0x70] sm:$0xff]  ;;  %v26_v40 = vld [vmem:[%s251_s0 + $0x78] sm:$0xff]  ;;  %v23_v41 = vld [vmem:[%s251_s0 + $0x60] sm:$0xff] }
  0x93   :  { %v24_v42 = vld [vmem:[%s251_s0 + $0x68] sm:$0xff]  ;;  %v89_v45 = vadd.f32 %v73_v43, %v25_v39  ;;  %v90_v46 = vadd.f32 %v73_v43, %v26_v40  ;;  %v87_v47 = vadd.f32 %v68_v44, %v23_v41 }
  0x94   :  { %101 = vst [vmem:[%s252_s2 + $0x50] sm:$0xff] %v85_v35  ;;  %102 = vst [vmem:[%s252_s2 + $0x58] sm:$0xff] %v86_v36  ;;  %v88_v48 = vadd.f32 %v68_v44, %v24_v42 }
  0x95   :  { %99 = vst [vmem:[%s252_s2 + $0x40] sm:$0xff] %v83_v37  ;;  %100 = vst [vmem:[%s252_s2 + $0x48] sm:$0xff] %v84_v38 }
  0x96   :  { %105 = vst [vmem:[%s252_s2 + $0x70] sm:$0xff] %v89_v45  ;;  %106 = vst [vmem:[%s252_s2 + $0x78] sm:$0xff] %v90_v46 }
  0x97   :  { %103 = vst [vmem:[%s252_s2 + $0x60] sm:$0xff] %v87_v47  ;;  %104 = vst [vmem:[%s252_s2 + $0x68] sm:$0xff] %v88_v48 }

</bundles_post_ra>
